<compile_context>
chip_gen: v6e
topology: v6e:2x2x1
jax: 0.10.0
libtpu: 0.0.40
codegen_flags: <defaults>
</compile_context>

<pallas_src>
import math

import jax
import jax.numpy as jnp
from jax.experimental import pallas as pl
from jax.experimental.pallas import tpu as pltpu

LN_EPS = 1e-5  # PyTorch nn.LayerNorm default


# ----------------------------- small helpers --------------------------------
def _layernorm(x, w, b):
    # x: (B, C) f32, w/b: (1, C) f32
    mu = jnp.mean(x, axis=-1, keepdims=True)
    var = jnp.mean(jnp.square(x - mu), axis=-1, keepdims=True)
    return (x - mu) * jax.lax.rsqrt(var + LN_EPS) * w + b


def _gelu_exact(x):
    # nn.GELU default = exact erf form
    return 0.5 * x * (1.0 + jax.lax.erf(x * (1.0 / math.sqrt(2.0))))


def _pick_tile(full, unit, max_tile):
    """Largest divisor of `full` that is a multiple of `unit` and <= max_tile.

    Falls back to `full` (i.e. an untiled, full-extent block — always legal)
    when no such divisor exists (e.g. small demo shapes below the 128-lane /
    8-sublane granule)."""
    if full <= max_tile or full % unit != 0:
        return full
    t = (max_tile // unit) * unit
    while t >= unit:
        if full % t == 0:
            return t
        t -= unit
    return full


def _vmem_capacity_bytes():
    """Per-core VMEM capacity (v5e/v6e: 128 MiB, v7x: 64 MiB). Conservative
    fallback if the query is unavailable."""
    try:
        return int(pltpu.get_tpu_info().vmem_capacity_bytes)
    except Exception:
        return 64 * 1024 * 1024


# ------------------------- phase 1: fused "attention" -----------------------
# attn[i] = sum_j LN1_j(x_j) @ fuse_w_j[:, i*C:(i+1)*C]
#         = concat_j(LN1_j(x_j)) @ W_cat_by_branch[i]
# Output is written directly as (N, B, C) bf16 (no reshape/transpose pass).
def _fuse_kernel(x_ref, ln1w_ref, ln1b_ref, wcat_ref, attn_ref, nxcat_ref):
    # x_ref: (N, TB, C) f32 | ln*: (N, 1, C) f32
    # wcat_ref: (N, NC, C) bf16 if resident else (1, NC, C) bf16 (streamed)
    # attn_ref: (1, TB, C) bf16 | nxcat_ref scratch: (TB, NC) bf16
    N, _, C = x_ref.shape
    d = pl.program_id(1)  # output branch index (inner, MUST stay "arbitrary")

    # The normalized/concatenated LHS only depends on the B-tile, not on the
    # output branch -> build it once per B-tile (d == 0, inner axis).
    @pl.when(d == 0)
    def _():
        for j in range(N):                                    # N small, static
            nx = _layernorm(x_ref[j], ln1w_ref[j], ln1b_ref[j])     # (TB, C)
            nxcat_ref[:, j * C:(j + 1) * C] = nx.astype(nxcat_ref.dtype)

    # One MXU matmul with contraction K = N*C (bf16 in, f32 accumulate).
    w = wcat_ref[d] if wcat_ref.shape[0] > 1 else wcat_ref[0]       # (NC, C)
    attn_ref[0] = jnp.dot(nxcat_ref[...], w,
                          preferred_element_type=jnp.float32
                          ).astype(attn_ref.dtype)


# ----------------- phase 2: per-branch proj + residual + Mlp ----------------
def _branch_kernel(x_ref, attn_ref,
                   pw_ref, pb_ref,
                   ln2w_ref, ln2b_ref,
                   fc1w_ref, fc1b_ref,
                   fc2w_ref, fc2b_ref,
                   out_ref,
                   x1_ref, ln2x_ref, acc_ref):
    # grid = (branch i, B-tile b, hidden-chunk h); h innermost "arbitrary".
    h = pl.program_id(2)
    nh = pl.num_programs(2)

    @pl.when(h == 0)
    def _():
        # proj_i( attn_i ) + residual-1 + norm2, computed once per (i, b).
        a = jnp.dot(attn_ref[0], pw_ref[0],
                    preferred_element_type=jnp.float32) + pb_ref[0]
        x1 = x_ref[0] + a                                       # residual 1 (f32)
        x1_ref[...] = x1
        ln2x_ref[...] = _layernorm(x1, ln2w_ref[0], ln2b_ref[0]).astype(
            ln2x_ref.dtype)
        acc_ref[...] = jnp.zeros_like(acc_ref)

    # fc1 chunk -> GELU -> fc2 chunk, accumulated in f32.
    hid = jnp.dot(ln2x_ref[...], fc1w_ref[0],
                  preferred_element_type=jnp.float32) + fc1b_ref[0]  # (TB2, TH)
    hid = _gelu_exact(hid)
    acc_ref[...] += jnp.dot(hid.astype(jnp.bfloat16), fc2w_ref[0],
                            preferred_element_type=jnp.float32)

    @pl.when(h == nh - 1)
    def _():
        out_ref[0] = x1_ref[...] + acc_ref[...] + fc2b_ref[0]   # residual 2


# --------------------------------- wrapper -----------------------------------
def attention_block(x_stacked, params):
    """x_stacked: (cross_num, B, C) f32. Returns (cross_num, B, C) f32."""
    N, B, C = x_stacked.shape
    H = params["fc1_w"].shape[-1]
    NC = N * C

    vmem_cap = _vmem_capacity_bytes()
    vmem_limit = int(min(vmem_cap // 2, 64 * 1024 * 1024))

    # Tile sizes (lane dims multiples of 128 or full extent; sublane mult of 8).
    TB = _pick_tile(B, 8, 512)      # phase-1 B tile
    TB2 = _pick_tile(B, 8, 512)     # phase-2 B tile
    TH = _pick_tile(H, 128, 512)    # phase-2 MLP hidden chunk

    # bf16 weights in HBM (halves HBM traffic & VMEM residency; f32 accumulate).
    # wcat_by_branch[i] = concat_j fuse_w[j][:, i*C:(i+1)*C]  -> (N, N*C, C)
    wcat = (params["fuse_w"].reshape(N, C, N, C)
            .transpose(2, 0, 1, 3).reshape(N, NC, C).astype(jnp.bfloat16))
    proj_w = params["proj_w"].astype(jnp.bfloat16)
    fc1_w = params["fc1_w"].astype(jnp.bfloat16)
    fc2_w = params["fc2_w"].astype(jnp.bfloat16)

    # W_cat residency: if the full (NC, NC) bf16 weight fits in ~1/4 of VMEM,
    # keep it resident (constant block index -> DMA'd once, never re-streamed
    # per B-tile); otherwise stream one branch column block per d step.
    wcat_resident = (2 * NC * NC) <= (vmem_cap // 4)
    if wcat_resident:
        wcat_spec = pl.BlockSpec((N, NC, C), lambda b, d: (0, 0, 0))
        wcat_bytes = 2 * NC * NC
    else:
        wcat_spec = pl.BlockSpec((1, NC, C), lambda b, d: (d, 0, 0))
        wcat_bytes = 2 * NC * NC * (B // TB)

    # ---------------- phase 1: concatenated fuse matmul ----------------
    # Output is (N, B, C) bf16, written directly (no reshape/transpose pass).
    attn = pl.pallas_call(
        _fuse_kernel,
        out_shape=jax.ShapeDtypeStruct((N, B, C), jnp.bfloat16),
        grid_spec=pltpu.PrefetchScalarGridSpec(
            num_scalar_prefetch=0,
            # d (branch) axis must stay inner + "arbitrary" (nxcat scratch).
            grid=(B // TB, N),
            in_specs=[
                pl.BlockSpec((N, TB, C), lambda b, d: (0, b, 0)),   # x
                pl.BlockSpec((N, 1, C), lambda b, d: (0, 0, 0)),    # ln1_w
                pl.BlockSpec((N, 1, C), lambda b, d: (0, 0, 0)),    # ln1_b
                wcat_spec,                                          # W_cat
            ],
            out_specs=pl.BlockSpec((1, TB, C), lambda b, d: (d, b, 0)),
            scratch_shapes=[pltpu.VMEM((TB, NC), jnp.bfloat16)],
        ),
        compiler_params=pltpu.CompilerParams(
            dimension_semantics=("parallel", "arbitrary"),
            vmem_limit_bytes=vmem_limit),
        cost_estimate=pl.CostEstimate(
            flops=2 * B * NC * NC + 10 * N * B * C,
            transcendentals=N * B,
            bytes_accessed=4 * N * B * C + 2 * B * NC + wcat_bytes),
    )(x_stacked, params["ln1_w"], params["ln1_b"], wcat)

    # ---------------- phase 2: per-branch proj + residual + Mlp ----------------
    # TODO(synk): if per-h fc1/fc2 weight DMAs become exposed at small TB2,
    # bump their BlockSpecs to pipeline_mode=pl.Buffered(3).
    out = pl.pallas_call(
        _branch_kernel,
        out_shape=jax.ShapeDtypeStruct((N, B, C), jnp.float32),
        grid_spec=pltpu.PrefetchScalarGridSpec(
            num_scalar_prefetch=0,
            grid=(N, B // TB2, H // TH),
            in_specs=[
                pl.BlockSpec((1, TB2, C), lambda i, b, h: (i, b, 0)),  # x
                pl.BlockSpec((1, TB2, C), lambda i, b, h: (i, b, 0)),  # attn (bf16)
                pl.BlockSpec((1, C, C), lambda i, b, h: (i, 0, 0)),    # proj_w
                pl.BlockSpec((1, 1, C), lambda i, b, h: (i, 0, 0)),    # proj_b
                pl.BlockSpec((1, 1, C), lambda i, b, h: (i, 0, 0)),    # ln2_w
                pl.BlockSpec((1, 1, C), lambda i, b, h: (i, 0, 0)),    # ln2_b
                pl.BlockSpec((1, C, TH), lambda i, b, h: (i, 0, h)),   # fc1_w
                pl.BlockSpec((1, 1, TH), lambda i, b, h: (i, 0, h)),   # fc1_b
                pl.BlockSpec((1, TH, C), lambda i, b, h: (i, h, 0)),   # fc2_w
                pl.BlockSpec((1, 1, C), lambda i, b, h: (i, 0, 0)),    # fc2_b
            ],
            out_specs=pl.BlockSpec((1, TB2, C), lambda i, b, h: (i, b, 0)),
            scratch_shapes=[
                pltpu.VMEM((TB2, C), jnp.float32),    # x1 (residual-1 result)
                pltpu.VMEM((TB2, C), jnp.bfloat16),   # LN2(x1), matmul LHS
                pltpu.VMEM((TB2, C), jnp.float32),    # fc2 accumulator
            ],
        ),
        compiler_params=pltpu.CompilerParams(
            dimension_semantics=("parallel", "parallel", "arbitrary"),
            vmem_limit_bytes=vmem_limit),
        cost_estimate=pl.CostEstimate(
            flops=N * (2 * B * C * C + 4 * B * C * H),
            transcendentals=N * B * (H + 1),
            bytes_accessed=(10 * N * B * C                 # x read + out write + attn read
                            + 2 * N * C * C                 # proj_w (once per branch)
                            + 4 * N * C * H * (B // TB2)    # fc1+fc2 per B-tile
                            + 4 * N * (4 * C + H))),
    )(x_stacked, attn, proj_w, params["proj_b"],
      params["ln2_w"], params["ln2_b"],
      fc1_w, params["fc1_b"], fc2_w, params["fc2_b"])
    return out


# ---------------- pure-JAX reference (mirrors the bf16 matmul casts) ---------
def _reference(x, params):
    N, B, C = x.shape
    bf = lambda a: a.astype(jnp.bfloat16)
    nx = [_layernorm(x[j], params["ln1_w"][j], params["ln1_b"][j])
          for j in range(N)]
    nx_cat = jnp.concatenate([bf(t) for t in nx], axis=-1)
    wcat = bf(params["fuse_w"].reshape(N * C, N * C))
    attn_cat = jnp.dot(nx_cat, wcat, preferred_element_type=jnp.float32)
    outs = []
    for i in range(N):
        a = jnp.dot(bf(attn_cat[:, i * C:(i + 1) * C]), bf(params["proj_w"][i]),
                    preferred_element_type=jnp.float32) + params["proj_b"][i]
        x1 = x[i] + a
        h = _layernorm(x1, params["ln2_w"][i], params["ln2_b"][i])
        h = jnp.dot(bf(h), bf(params["fc1_w"][i]),
                    preferred_element_type=jnp.float32) + params["fc1_b"][i]
        h = _gelu_exact(h)
        y = jnp.dot(bf(h), bf(params["fc2_w"][i]),
                    preferred_element_type=jnp.float32) + params["fc2_b"][i]
        outs.append(x1 + y)
    return jnp.stack(outs, axis=0)


def _init_params(key, cross_num, dim, mlp_ratio=4.0):
    N, C = cross_num, dim
    H = int(C * mlp_ratio)
    ks = jax.random.split(key, 8)
    sc = 0.05
    return {
        # LayerNorm params stored as (N, 1, C) so kernel slices are 2D.
        "ln1_w": jnp.ones((N, 1, C), jnp.float32),
        "ln1_b": jnp.zeros((N, 1, C), jnp.float32),
        # MLPFusion mlp[i]: Linear(dim, cross_num*dim, bias=False)
        "fuse_w": sc * jax.random.normal(ks[0], (N, C, N * C), jnp.float32),
        # MLPFusion proj[i]: Linear(dim, dim)
        "proj_w": sc * jax.random.normal(ks[1], (N, C, C), jnp.float32),
        "proj_b": sc * jax.random.normal(ks[2], (N, 1, C), jnp.float32),
        "ln2_w": jnp.ones((N, 1, C), jnp.float32),
        "ln2_b": jnp.zeros((N, 1, C), jnp.float32),
        # Mlp[i]: fc1 (dim->hidden), fc2 (hidden->dim)
        "fc1_w": sc * jax.random.normal(ks[3], (N, C, H), jnp.float32),
        "fc1_b": sc * jax.random.normal(ks[4], (N, 1, H), jnp.float32),
        "fc2_w": sc * jax.random.normal(ks[5], (N, H, C), jnp.float32),
        "fc2_b": sc * jax.random.normal(ks[6], (N, 1, C), jnp.float32),
    }


if __name__ == "__main__":
    cross_num, B, dim = 2, 8, 32          # small shapes consistent with the module
    key = jax.random.PRNGKey(0)
    kx, kp = jax.random.split(key)

    # x is a list of cross_num tensors of shape (B, dim); stack for the kernel.
    x_stacked = 0.1 * jax.random.normal(kx, (cross_num, B, dim), jnp.float32)
    params = _init_params(kp, cross_num, dim, mlp_ratio=4.0)

    out = attention_block(x_stacked, params)
    out = jax.block_until_ready(out)

    ref = _reference(x_stacked, params)
    if not jnp.allclose(out, ref, atol=1e-2, rtol=1e-2):
        max_err = float(jnp.max(jnp.abs(out - ref)))
        raise AssertionError(
            f"Pallas kernel output does not match reference (max |err|={max_err})")

    print("KERNEL_OK")
</pallas_src>

<mosaic_0001>
module attributes {stable_mosaic.version = 11 : i64} {
  func.func @_fuse_kernel(%arg0: i32, %arg1: i32, %arg2: memref<2x8x32xf32, #tpu.memory_space<vmem>>, %arg3: memref<2x1x32xf32, #tpu.memory_space<vmem>>, %arg4: memref<2x1x32xf32, #tpu.memory_space<vmem>>, %arg5: memref<2x64x32xbf16, #tpu.memory_space<vmem>>, %arg6: memref<1x8x32xbf16, #tpu.memory_space<vmem>>, %arg7: memref<8x64xbf16, #tpu.memory_space<vmem>>) attributes {dimension_semantics = [#tpu.dimension_semantics<parallel>, #tpu.dimension_semantics<arbitrary>], iteration_bounds = array<i64: 1, 2>, scalar_prefetch = 0 : i64, scratch_operands = 1 : i64, tpu.core_type = #tpu.core_type<tc>, window_params = [{transform_indices = @transform_0, window_bounds = array<i64: 2, 8, 32>}, {pipeline_mode = #tpu.pipeline_mode<synchronous>, transform_indices = @transform_1, window_bounds = array<i64: 2, 1, 32>}, {pipeline_mode = #tpu.pipeline_mode<synchronous>, transform_indices = @transform_2, window_bounds = array<i64: 2, 1, 32>}, {pipeline_mode = #tpu.pipeline_mode<synchronous>, transform_indices = @transform_3, window_bounds = array<i64: 2, 64, 32>}, {transform_indices = @transform_4, window_bounds = array<i64: 1, 8, 32>}]} {
    %c0_i32 = arith.constant 0 : i32
    %0 = arith.cmpi eq, %arg1, %c0_i32 : i32
    %1 = arith.extui %0 : i1 to i32
    %c0_i32_0 = arith.constant 0 : i32
    %2 = arith.cmpi ne, %1, %c0_i32_0 : i32
    scf.if %2 {
      %c0_7 = arith.constant 0 : index
      %c0_8 = arith.constant 0 : index
      %c0_9 = arith.constant 0 : index
      %12 = vector.load %arg2[%c0_7, %c0_8, %c0_9] : memref<2x8x32xf32, #tpu.memory_space<vmem>>, vector<1x8x32xf32>
      %13 = vector.shape_cast %12 : vector<1x8x32xf32> to vector<8x32xf32>
      %c0_10 = arith.constant 0 : index
      %c0_11 = arith.constant 0 : index
      %c0_12 = arith.constant 0 : index
      %14 = vector.load %arg3[%c0_10, %c0_11, %c0_12] : memref<2x1x32xf32, #tpu.memory_space<vmem>>, vector<1x1x32xf32>
      %15 = vector.shape_cast %14 : vector<1x1x32xf32> to vector<1x32xf32>
      %c0_13 = arith.constant 0 : index
      %c0_14 = arith.constant 0 : index
      %c0_15 = arith.constant 0 : index
      %16 = vector.load %arg4[%c0_13, %c0_14, %c0_15] : memref<2x1x32xf32, #tpu.memory_space<vmem>>, vector<1x1x32xf32>
      %17 = vector.shape_cast %16 : vector<1x1x32xf32> to vector<1x32xf32>
      %cst_16 = arith.constant dense<0.000000e+00> : vector<8xf32>
      %18 = vector.multi_reduction <add>, %13, %cst_16 [1] : vector<8x32xf32> to vector<8xf32>
      %19 = vector.shape_cast %18 : vector<8xf32> to vector<8x1xf32>
      %cst_17 = arith.constant 3.200000e+01 : f32
      %20 = vector.broadcast %cst_17 : f32 to vector<8x1xf32>
      %21 = arith.divf %19, %20 : vector<8x1xf32>
      %22 = vector.broadcast %21 : vector<8x1xf32> to vector<8x32xf32>
      %23 = arith.subf %13, %22 : vector<8x32xf32>
      %24 = arith.mulf %23, %23 : vector<8x32xf32>
      %cst_18 = arith.constant dense<0.000000e+00> : vector<8xf32>
      %25 = vector.multi_reduction <add>, %24, %cst_18 [1] : vector<8x32xf32> to vector<8xf32>
      %26 = vector.shape_cast %25 : vector<8xf32> to vector<8x1xf32>
      %cst_19 = arith.constant 3.200000e+01 : f32
      %27 = vector.broadcast %cst_19 : f32 to vector<8x1xf32>
      %28 = arith.divf %26, %27 : vector<8x1xf32>
      %29 = vector.broadcast %21 : vector<8x1xf32> to vector<8x32xf32>
      %30 = arith.subf %13, %29 : vector<8x32xf32>
      %cst_20 = arith.constant 9.99999974E-6 : f32
      %31 = vector.broadcast %cst_20 : f32 to vector<8x1xf32>
      %32 = arith.addf %28, %31 : vector<8x1xf32>
      %33 = math.rsqrt %32 : vector<8x1xf32>
      %34 = vector.broadcast %33 : vector<8x1xf32> to vector<8x32xf32>
      %35 = arith.mulf %30, %34 : vector<8x32xf32>
      %36 = vector.broadcast %15 : vector<1x32xf32> to vector<8x32xf32>
      %37 = arith.mulf %35, %36 : vector<8x32xf32>
      %38 = vector.broadcast %17 : vector<1x32xf32> to vector<8x32xf32>
      %39 = arith.addf %37, %38 : vector<8x32xf32>
      %40 = arith.truncf %39 : vector<8x32xf32> to vector<8x32xbf16>
      %c0_21 = arith.constant 0 : index
      %c0_22 = arith.constant 0 : index
      %41 = vector.load %arg7[%c0_21, %c0_22] : memref<8x64xbf16, #tpu.memory_space<vmem>>, vector<8x32xbf16>
      tpu.vector_store %arg7[%c0_21, %c0_22], %40 {strides = array<i32>} : memref<8x64xbf16, #tpu.memory_space<vmem>>, vector<8x32xbf16>,
      %c1 = arith.constant 1 : index
      %c0_23 = arith.constant 0 : index
      %c0_24 = arith.constant 0 : index
      %42 = vector.load %arg2[%c1, %c0_23, %c0_24] : memref<2x8x32xf32, #tpu.memory_space<vmem>>, vector<1x8x32xf32>
      %43 = vector.shape_cast %42 : vector<1x8x32xf32> to vector<8x32xf32>
      %c1_25 = arith.constant 1 : index
      %c0_26 = arith.constant 0 : index
      %c0_27 = arith.constant 0 : index
      %44 = vector.load %arg3[%c1_25, %c0_26, %c0_27] : memref<2x1x32xf32, #tpu.memory_space<vmem>>, vector<1x1x32xf32>
      %45 = vector.shape_cast %44 : vector<1x1x32xf32> to vector<1x32xf32>
      %c1_28 = arith.constant 1 : index
      %c0_29 = arith.constant 0 : index
      %c0_30 = arith.constant 0 : index
      %46 = vector.load %arg4[%c1_28, %c0_29, %c0_30] : memref<2x1x32xf32, #tpu.memory_space<vmem>>, vector<1x1x32xf32>
      %47 = vector.shape_cast %46 : vector<1x1x32xf32> to vector<1x32xf32>
      %cst_31 = arith.constant dense<0.000000e+00> : vector<8xf32>
      %48 = vector.multi_reduction <add>, %43, %cst_31 [1] : vector<8x32xf32> to vector<8xf32>
      %49 = vector.shape_cast %48 : vector<8xf32> to vector<8x1xf32>
      %cst_32 = arith.constant 3.200000e+01 : f32
      %50 = vector.broadcast %cst_32 : f32 to vector<8x1xf32>
      %51 = arith.divf %49, %50 : vector<8x1xf32>
      %52 = vector.broadcast %51 : vector<8x1xf32> to vector<8x32xf32>
      %53 = arith.subf %43, %52 : vector<8x32xf32>
      %54 = arith.mulf %53, %53 : vector<8x32xf32>
      %cst_33 = arith.constant dense<0.000000e+00> : vector<8xf32>
      %55 = vector.multi_reduction <add>, %54, %cst_33 [1] : vector<8x32xf32> to vector<8xf32>
      %56 = vector.shape_cast %55 : vector<8xf32> to vector<8x1xf32>
      %cst_34 = arith.constant 3.200000e+01 : f32
      %57 = vector.broadcast %cst_34 : f32 to vector<8x1xf32>
      %58 = arith.divf %56, %57 : vector<8x1xf32>
      %59 = vector.broadcast %51 : vector<8x1xf32> to vector<8x32xf32>
      %60 = arith.subf %43, %59 : vector<8x32xf32>
      %cst_35 = arith.constant 9.99999974E-6 : f32
      %61 = vector.broadcast %cst_35 : f32 to vector<8x1xf32>
      %62 = arith.addf %58, %61 : vector<8x1xf32>
      %63 = math.rsqrt %62 : vector<8x1xf32>
      %64 = vector.broadcast %63 : vector<8x1xf32> to vector<8x32xf32>
      %65 = arith.mulf %60, %64 : vector<8x32xf32>
      %66 = vector.broadcast %45 : vector<1x32xf32> to vector<8x32xf32>
      %67 = arith.mulf %65, %66 : vector<8x32xf32>
      %68 = vector.broadcast %47 : vector<1x32xf32> to vector<8x32xf32>
      %69 = arith.addf %67, %68 : vector<8x32xf32>
      %70 = arith.truncf %69 : vector<8x32xf32> to vector<8x32xbf16>
      %c0_36 = arith.constant 0 : index
      %c32 = arith.constant 32 : index
      %71 = vector.load %arg7[%c0_36, %c32] : memref<8x64xbf16, #tpu.memory_space<vmem>>, vector<8x32xbf16>
      tpu.vector_store %arg7[%c0_36, %c32], %70 {strides = array<i32>} : memref<8x64xbf16, #tpu.memory_space<vmem>>, vector<8x32xbf16>,
    } else {
    }
    %3 = arith.index_cast %arg1 : i32 to index
    %c0 = arith.constant 0 : index
    %c0_1 = arith.constant 0 : index
    %4 = vector.load %arg5[%3, %c0, %c0_1] : memref<2x64x32xbf16, #tpu.memory_space<vmem>>, vector<1x64x32xbf16>
    %5 = vector.shape_cast %4 : vector<1x64x32xbf16> to vector<64x32xbf16>
    %c0_2 = arith.constant 0 : index
    %c0_3 = arith.constant 0 : index
    %6 = vector.load %arg7[%c0_2, %c0_3] : memref<8x64xbf16, #tpu.memory_space<vmem>>, vector<8x64xbf16>
    %cst = arith.constant dense<0.000000e+00> : vector<8x32xf32>
    %7 = tpu.matmul %6, %5, %cst {dimension_numbers = #tpu.dot_dimension_numbers<[1], [0], [0], [1], [0, 0, 1, 1], [], []>} : vector<8x64xbf16>, vector<64x32xbf16>, vector<8x32xf32> -> vector<8x32xf32>
    %8 = arith.truncf %7 : vector<8x32xf32> to vector<8x32xbf16>
    %c0_4 = arith.constant 0 : index
    %c0_5 = arith.constant 0 : index
    %c0_6 = arith.constant 0 : index
    %9 = vector.load %arg6[%c0_4, %c0_5, %c0_6] : memref<1x8x32xbf16, #tpu.memory_space<vmem>>, vector<1x8x32xbf16>
    %10 = vector.shape_cast %9 : vector<1x8x32xbf16> to vector<8x32xbf16>
    %11 = vector.shape_cast %8 : vector<8x32xbf16> to vector<1x8x32xbf16>
    tpu.vector_store %arg6[%c0_4, %c0_5, %c0_6], %11 {strides = array<i32>} : memref<1x8x32xbf16, #tpu.memory_space<vmem>>, vector<1x8x32xbf16>,
    return
  }
  func.func @transform_0(%arg0: i32, %arg1: i32) -> (i32, i32, i32) {
    %c0_i32 = arith.constant 0 : i32
    %c0_i32_0 = arith.constant 0 : i32
    %c0_i32_1 = arith.constant 0 : i32
    return %c0_i32, %arg0, %c0_i32_0 : i32, i32, i32
  }
  func.func @transform_1(%arg0: i32, %arg1: i32) -> (i32, i32, i32) {
    %c0_i32 = arith.constant 0 : i32
    %c0_i32_0 = arith.constant 0 : i32
    %c0_i32_1 = arith.constant 0 : i32
    %c0_i32_2 = arith.constant 0 : i32
    return %c0_i32, %c0_i32_0, %c0_i32_1 : i32, i32, i32
  }
  func.func @transform_2(%arg0: i32, %arg1: i32) -> (i32, i32, i32) {
    %c0_i32 = arith.constant 0 : i32
    %c0_i32_0 = arith.constant 0 : i32
    %c0_i32_1 = arith.constant 0 : i32
    %c0_i32_2 = arith.constant 0 : i32
    return %c0_i32, %c0_i32_0, %c0_i32_1 : i32, i32, i32
  }
  func.func @transform_3(%arg0: i32, %arg1: i32) -> (i32, i32, i32) {
    %c0_i32 = arith.constant 0 : i32
    %c0_i32_0 = arith.constant 0 : i32
    %c0_i32_1 = arith.constant 0 : i32
    %c0_i32_2 = arith.constant 0 : i32
    return %c0_i32, %c0_i32_0, %c0_i32_1 : i32, i32, i32
  }
  func.func @transform_4(%arg0: i32, %arg1: i32) -> (i32, i32, i32) {
    %c0_i32 = arith.constant 0 : i32
    %c0_i32_0 = arith.constant 0 : i32
    return %arg1, %arg0, %c0_i32 : i32, i32, i32
  }
}

</mosaic_0001>

<bundles_post_ra>
// kernel: tpu_custom_call.1
= control target key start
LH: loop header
LB: loop body
LE: loop exit
PB: predicated region body
PF: predicated region fallthrough
CT: control target
= control target key end

     0   :  { %9 = vsyncpa [#allocation4], 0  ;;  %s822_s0 = inlined_call_operand.vmem [shape: f32[2,8,32], index: 0, kind: input, shape index: {}]   ;;  %s823_s1 = inlined_call_operand.vmem [shape: f32[2,1,32], index: 1, kind: input, shape index: {}]   ;;  %s824_s2 = inlined_call_operand.vmem [shape: f32[2,1,32], index: 2, kind: input, shape index: {}]   ;;  %s825_s3 = inlined_call_operand.vmem [shape: bf16[2,64,32], index: 3, kind: input, shape index: {}]   ;;  %s826_s4 = inlined_call_operand.hbm [shape: bf16[2,8,32], index: 4, kind: output, shape index: {}]  }
   0x1   :  { %11 = vsyncpa [#allocation4 + $0x1], 0  ;;  %s678_s15 = smov 0   ;;  %s680_s16 = smov 0  }
   0x2   :  { %s682_s17 = smov 0   ;;  %s684_s18 = smov 0  }
   0x3   :  { %s686_s19 = smov 0   ;;  %s688_s20 = smov 0  }
   0x4 LB: > { %s460_s21 = sadd.s32 4294967295, %s647_s20   ;;  %s461_s22 = sadd.s32 4294967294, %s647_s20   ;;  %s647_s20 = sphi %s688_s20, %s17_s20   ;;  %s643_s19 = sphi %s686_s19, %s833_s19   ;;  %s639_s18 = sphi %s684_s18, %s832_s18   ;;  %s635_s17 = sphi %s682_s17, %s831_s17   ;;  %s631_s16 = sphi %s680_s16, %s830_s16   ;;  %s627_s15 = sphi %s678_s15, %s829_s15  }
   0x5   : > { %s26_s23 = sadd.s32 1, %s643_s19  ;;  %s127_s24 = sadd.s32 1, %s635_s17 }
   0x6   : > { %p27_p0 = scmp.ge.s32.totalorder %s26_s23, 2  ;;  %p137_p1 = scmp.ne.s32.totalorder %s635_s17, %s631_s16 }
   0x7   : > { %p138_p2 = scmp.eq.s32.totalorder %s460_s21, 1  ;;  %p143_p3 = scmp.ne.s32.totalorder %s631_s16, %s627_s15 }
   0x8   : > { %s835_s23 = smov (%p27_p0, %s26_s23), 0  ;;  %p144_p5 = scmp.eq.s32.totalorder %s461_s22, 1 }
   0x9   : > { %p718_p4 = por %p138_p2, %p137_p1  ;;  %s122_s26 = ssub.s32 %s643_s19, %s835_s23 }
   0xa   : > { %p464_p6 = scmp.ge.s32.totalorder %s647_s20, 1  ;;  %p125_p7 = scmp.eq.s32.totalorder %s122_s26, 0 }
   0xb   : > { %p725_p8 = por %p144_p5, %p143_p3  ;;  %p178_p9 = scmp.lt.s32.totalorder %s647_s20, 3 }
   0xc   : > { %s731_s28 = scalar_select %p125_p7, %s635_s17, %s127_s24  }
   0xd   : > { %p179_p10 = pnand %p464_p6, %p178_p9 }
   0xe   : > { %s200_s29 = sand.u32 (!%p179_p10), 1, %s631_s16   ;;  %p466_p11 = scmp.ne.s32.totalorder (!%p179_p10), %s639_s18, 0 }
   0xf   : > { %182 = sbr.rel (%p179_p10) target bundleno = 679 (0x2a7), region = 36  ;;  %s736_s30 = sshll.u32 (!%p179_p10), %s200_s29, 2 }
  0x10   : > { %s202_s5 = scalar_lea.vmem (!%p179_p10), [#allocation3], %s736_s30 }
  0x14   : > { %211 = sbr.rel (%p466_p11) target bundleno = 452 (0x1c4), region = 40  ;;  %s649_s26 = smov (!%p466_p11), 32  }
  0x19   : > { %vm215_vm0 = vcmask 261120   ;;  %v469_v0 = vld [vmem:[%s822_s0 + $0x8] sm:$0xff]  ;;  %v212_v1 = vld [vmem:[%s822_s0] sm:$0xff]  ;;  %vm245_vm1 = vcmask 257024   ;;  %vm287_vm2 = vcmask 519424  }
  0x1a   : > { %v253_v2 = vsel %vm215_vm0, %v469_v0, 0.0  ;;  %v216_v3 = vsel %vm215_vm0, %v212_v1, 0.0  ;;  %v472_v21 = vld [vmem:[%s823_s1 + $0x1] ss:$0 sm:$0xff]  ;;  %v467_v26 = vld [vmem:[%s823_s1] ss:$0 sm:$0xff] }
  0x1b   : > { %254 = vadd.xlane.f32.xlu0 %v253_v2  ;;  %v473_v23 = vld [vmem:[%s824_s2 + $0x1] ss:$0 sm:$0xff]  ;;  %v468_v29 = vld [vmem:[%s824_s2] ss:$0 sm:$0xff] }
  0x1f   : > { %217 = vadd.xlane.f32.xlu0 %v216_v3 }
  0xa4   : > { %v255_v4 = vpop.xlane.xlu0 %254 }
  0xa5   : > { %v256_v5 = vmul.f32 0.03125, %v255_v4 }
  0xa7   : > { %v257_v6 = vsub.f32 %v469_v0, %v256_v5 }
  0xa8   : > { %v218_v7 = vpop.xlane.xlu0 %217 }
  0xa9   : > { %v220_v8 = vmul.f32 0.03125, %v218_v7  ;;  %v258_v9 = vmul.f32 %v257_v6, %v257_v6 }
  0xab   : > { %v221_v10 = vsub.f32 %v212_v1, %v220_v8  ;;  %v259_v11 = vsel %vm215_vm0, %v258_v9, 0.0 }
  0xac   : > { %260 = vadd.xlane.f32.xlu1 %v259_v11 }
  0xad   : > { %v222_v12 = vmul.f32 %v221_v10, %v221_v10 }
  0xaf   : > { %v223_v13 = vsel %vm215_vm0, %v222_v12, 0.0 }
  0xb0   : > { %224 = vadd.xlane.f32.xlu1 %v223_v13 }
 0x135   : > { %v261_v14 = vpop.xlane.xlu1 %260 }
 0x136   : > { %v262_v15 = vmul.f32 0.03125, %v261_v14 }
 0x138   : > { %v263_v16 = vadd.f32 1e-05, %v262_v15 }
 0x139   : > { %v225_v17 = vpop.xlane.xlu1 %224 }
 0x13a   : > { %563 = vrsqrt.f32 %v263_v16  ;;  %v226_v18 = vmul.f32 0.03125, %v225_v17 }
 0x13c   : > { %v227_v19 = vadd.f32 1e-05, %v226_v18 }
 0x13e   : > { %565 = vrsqrt.f32 %v227_v19 }
 0x147   : > { %v564_v20 = vpop.eup %563 }
 0x148   : > { %v265_v22 = vmul.f32 %v564_v20, %v257_v6 }
 0x14a   : > { %v272_v24 = vmul.f32 %v472_v21, %v265_v22 }
 0x14b   : > { %v566_v25 = vpop.eup %565 }
 0x14c   : > { %v279_v27 = vadd.f32 %v473_v23, %v272_v24  ;;  %v229_v28 = vmul.f32 %v566_v25, %v221_v10 }
 0x14e   : > { %v486_v30 = vpack.c.bf16 %v279_v27, %v279_v27  ;;  %v236_v31 = vmul.f32 %v467_v26, %v229_v28 }
 0x150   : > { %284 = vrot.lane.b32.xlu0 %v486_v30, %s649_s26  ;;  %v243_v32 = vadd.f32 %v468_v29, %v236_v31 }
 0x152   : > { %v244_v33 = vpack.c.bf16 %v243_v32, %v243_v32 }
 0x154   : > { %246 = vst.msk [vmem:[#allocation2] sm:$0xf] %vm245_vm1, %v244_v33 }
 0x1c2   : > { %v285_v34 = vpop.permute.xlu0 %284 }
 0x1c3   : > { %288 = vst.msk [vmem:[#allocation2] sm:$0xf] %vm287_vm2, %v285_v34 }
 0x1c4 PF: > { %s487_s6 = sshll.u32 %s639_s18, 5  ;;  %v650_v35 = vmov 0.0   ;;  %vm651_vm3 = vmmov 0   ;;  %vm325_vm4 = vcmask 523264   ;;  %s483_s10 = sshll.u32 %s639_s18, 6  ;;  %vm370_vm5 = vcmask 257024  }
 0x1c5   : > { %493 = vmatprep.subr.bf16.mxu0 %v650_v35  ;;  %s291_s9 = scalar_lea.vmem %s825_s3, %s487_s6  ;;  %501 = vmatprep.mubr.msk.bf16.mxu0 %vm651_vm3, %v650_v35  ;;  %s387_s11 = sshll.u32 %s202_s5, 4  ;;  %s774_s11 = int_to_ptr.vmem [resolvable:$true] %s387_s11 }
 0x1c6   : > { %v567_v36 = vld [vmem:[%s291_s9 + $0x18] sm:$0xff]   ;;  %v568_v37 = vld [vmem:[%s291_s9 + $0x10] sm:$0xff]   ;;  %v569_v38 = vld [vmem:[%s291_s9 + $0x8] sm:$0xff]   ;;  %s772_s14 = scalar_lea.hbm %s826_s4, %s483_s10  ;;  %s373_s18 = scalar_lea.sflag [#allocation4], %s200_s29 }
 0x1c7   : > { %494 = vmatpush3.bf16.msra.mxu0 %v567_v36  ;;  %v570_v39 = vld [vmem:[%s291_s9] sm:$0xff]   ;;  %s571_s21 = scalar_lea.vmem %s774_s11, 64  ;;  %s652_s22 = smov [#allocation3]  }
 0x1c8   : > { %495 = vmatprep.subr.bf16.mxu0 %v650_v35  ;;  %p572_p12 = scmp.ne.s32.totalorder %s774_s11, %s571_s21  ;;  %s575_s24 = sshll.u32 %s652_s22, 4  ;;  %s576_s24 = int_to_ptr.vmem [resolvable:$false] %s575_s24 }
 0x1c9   : > { %s577_s26 = scalar_lea.vmem %s576_s24, 128  ;;  %p578_p1 = scmp.lt.s32.totalorder %s774_s11, %s576_s24 }
 0x1ca   : > { %v300_v40 = vld [vmem:[#allocation2] sm:$0xf]  ;;  %p573_p13 = pnand %p572_p12, %p718_p4  ;;  %p579_p2 = scmp.lt.s32.totalorder %s577_s26, %s571_s21 }
 0x1cb   : > { %496 = vmatpush3.bf16.msra.mxu0 %v568_v37 }
 0x1cc   : > { %497 = vmatprep.subr.bf16.mxu0 %v650_v35  ;;  %p574_p0 = pneg %p573_p13  ;;  %p580_p3 = por %p579_p2, %p578_p1 }
 0x1ce   : > { %p581_p5 = pnand %p580_p3, %p574_p0 }
 0x1cf   : > { %498 = vmatpush3.bf16.msra.mxu0 %v569_v38 }
 0x1d0   : > { %499 = vmatprep.subr.bf16.mxu0 %v650_v35 }
 0x1d3   : > { %500 = vmatpush3.bf16.msra.mxu0 %v570_v39 }
 0x1d6   : > { %502 = vmatmul.mubr.msk.bf16.vlgmr.msra.gmra.mxu0 %vm325_vm4, %v300_v40 }
 0x296   : > { %v363_v41 = vpop.f32.mrf.mxu0 }
 0x297   : > { %v369_v42 = vpack.c.bf16 %v363_v41, %v363_v41 }
 0x298   : > { %v503_v43 = vpop.f32.mrf.mxu0 }
 0x299   : > { %371 = vst.msk [vmem:[%s202_s5] sm:$0xf] %vm370_vm5, %v369_v42 }
 0x29a   : > { %v366_v44 = vpop.f32.mrf.mxu0 }
 0x29b   : > { %584 = shalt.err (!%p581_p5)
}
 0x29c   : > { %s585_s30 = scalar_lea.hbm %s772_s14, 64  ;;  %s589_s6 = scalar_lea.hbm %s826_s4, 128 }
 0x29d   : > { %p586_p6 = scmp.ne.s32.totalorder %s772_s14, %s585_s30  ;;  %p590_p10 = scmp.lt.s32.totalorder %s772_s14, %s826_s4 }
 0x29e   : > { %p591_p11 = scmp.lt.s32.totalorder %s589_s6, %s585_s30 }
 0x29f   : > { %p587_p7 = pnand %p586_p6, %p718_p4 }
 0x2a0   : > { %p592_p12 = por %p591_p11, %p590_p10 }
 0x2a1   : > { %p588_p9 = pneg %p587_p7 }
 0x2a3   : > { %p593_p13 = pnand %p592_p12, %p588_p9 }
 0x2a5   : > { %596 = shalt.err (!%p593_p13)
}
 0x2a6   : > { %505 = dma.vmem_to_hbm [thread:$0]  (%p718_p4), %s774_s11, 64, %s772_s14, %s373_s18   ;;  %v504_v45 = vpop.f32.mrf.mxu0 }
 0x2a7 PF: > { %p511_p0 = scmp.ge.s32.totalorder %s647_s20, 2  ;;  %s399_s9 = sand.u32 1, %s627_s15  }
 0x2a8   : > { %s400_s10 = scalar_lea.sflag [#allocation4], %s399_s9 }
 0x2a9   : > { %p508_p1 = pnand %p511_p0, %p725_p8 }
 0x2ab   : > { %p509_p2 = pneg %p508_p1 }
 0x2ad   : > { %622 = dma.done.wait (%p509_p2), %s400_s10, 64  }
 0x2ae   : > { %624 = vsyncadd (%p509_p2), %s400_s10, 4294967232  ;;  %s17_s20 = sadd.s32 1, %s647_s20   ;;  %s829_s15 = smov %s631_s16 }
 0x2af   : > { %p14_p3 = scmp.ge.s32.totalorder %s17_s20, 4   ;;  %s830_s16 = smov %s635_s17 }
 0x2b0   : > { %s831_s17 = smov %s731_s28  ;;  %s832_s18 = smov %s643_s19 }
 0x2b1   : > { %s833_s19 = smov %s835_s23  ;;  %16 = sbr.rel (!%p14_p3) target bundleno = 4 (0x4), region = 79 }
 0x2b6   :  { %405 = vsyncpa [#allocation4], 1 }
 0x2b7   :  { %407 = vsyncpa [#allocation4 + $0x1], 1 }

</bundles_post_ra>
